<compile_context>
chip_gen: v5e
topology: v5e:2x2
jax: 0.10.0
libtpu: 0.0.40
codegen_flags: <defaults>
</compile_context>

<pallas_src>
import jax
import jax.numpy as jnp
from jax.experimental import pallas as pl
from jax.experimental.pallas import tpu as pltpu


def _round_up(a, b):
    return (a + b - 1) // b * b


def _pick_tile(dim, target, align):
    """Pick (tile, padded_dim): tile is `align`-aligned, <= target, and the
    padded dim it implies wastes as little as possible (<= one tile)."""
    dim_a = _round_up(max(dim, 1), align)
    if dim_a <= target:
        return dim_a, dim_a
    best = None
    t = (target // align) * align
    while t >= align:
        padded = _round_up(dim_a, t)
        waste = padded - dim_a
        if best is None or waste < best[2]:
            best = (t, padded, waste)
        if waste == 0:
            break
        t -= align
    return best[0], best[1]


def _vmem_limit_bytes():
    cap = 64 * 1024 * 1024
    try:
        info = pltpu.get_tpu_info()
        c = getattr(info, "vmem_capacity_bytes", None)
        if c:
            cap = int(c)
    except Exception:
        pass
    # ~48 MiB on v7x (64 MiB VMEM), ~96-100 MiB on v5e/v6e (128 MiB VMEM).
    return int(min(cap * 3 // 4, 100 * 1024 * 1024))


def _linear_kernel(x_ref, w_ref, b_ref, o_ref, acc_ref):
    # x_ref:   (tm, tk)  input tile (kept in its original dtype, e.g. f32)
    # w_ref:   (tk, tn)  pre-transposed weight tile (bf16 or f32)
    # b_ref:   (1,  tn)  bias tile (f32)
    # o_ref:   (tm, tn)  output tile
    # acc_ref: (tm, tn)  f32 accumulator, resident across the K grid axis
    k = pl.program_id(2)

    @pl.when(k == 0)
    def _():
        acc_ref[...] = jnp.zeros_like(acc_ref)

    # Cast x on the VPU (hidden under the MXU); plain NN matmul, f32 accum.
    acc_ref[...] += jnp.dot(
        x_ref[...].astype(w_ref.dtype), w_ref[...],
        preferred_element_type=jnp.float32,
    )

    # Bias is added exactly once, at the final K step.
    @pl.when(k == pl.num_programs(2) - 1)
    def _():
        o_ref[...] = (acc_ref[...] + b_ref[...]).astype(o_ref.dtype)


def prepare_classifier_params(weight, bias, *, use_bf16=True,
                              tn_target=1024, tk_target=1024):
    """One-time parameter preprocessing ("model init").

    weight: (N, K) PyTorch nn.Linear layout; bias: (N,).
    Pre-transposes to (K, N), casts (optionally to bf16) and pads once, so the
    per-call forward never touches the full weight outside the kernel DMA.
    """
    N, K = weight.shape
    tk, K_pad = _pick_tile(K, tk_target, 128)
    tn, N_pad = _pick_tile(N, tn_target, 128)
    wdt = jnp.bfloat16 if use_bf16 else weight.dtype
    wt = jnp.zeros((K_pad, N_pad), wdt).at[:K, :N].set(weight.T.astype(wdt))
    bp = jnp.zeros((1, N_pad), jnp.float32).at[0, :N].set(
        bias.astype(jnp.float32))
    return {"wt": wt, "b": bp, "N": N, "K": K, "tn": tn, "tk": tk}


def classifier_forward(x, params, *, tm_target=512):
    """Linear classifier forward: x @ weight.T + bias, using prepared params."""
    wt, bp = params["wt"], params["b"]
    N, K, tn, tk = params["N"], params["K"], params["tn"], params["tk"]
    K_pad, N_pad = wt.shape

    out_dtype = x.dtype
    lead_shape = x.shape[:-1]
    assert x.shape[-1] == K, "feature dim mismatch"
    x2 = x.reshape(-1, K)
    M = x2.shape[0]

    # M only needs sublane (8) alignment; cover the whole batch with one tile
    # when it fits so the weight is streamed from HBM exactly once.
    tm, M_pad = _pick_tile(M, tm_target, 8)

    if (M_pad, K_pad) != (M, K):
        xp = jnp.zeros((M_pad, K_pad), x2.dtype).at[:M, :K].set(x2)
    else:
        xp = x2

    # N-tile axis leads: on megacore the weight (dominant bytes) is sharded
    # across cores instead of being streamed twice.
    grid = (N_pad // tn, M_pad // tm, K_pad // tk)

    bytes_accessed = (xp.size * xp.dtype.itemsize
                      + wt.size * wt.dtype.itemsize
                      + bp.size * bp.dtype.itemsize
                      + M_pad * N_pad * jnp.dtype(out_dtype).itemsize)
    cost = pl.CostEstimate(flops=2 * M_pad * N_pad * K_pad,
                           transcendentals=0,
                           bytes_accessed=int(bytes_accessed))

    out = pl.pallas_call(
        _linear_kernel,
        out_shape=jax.ShapeDtypeStruct((M_pad, N_pad), out_dtype),
        grid_spec=pltpu.PrefetchScalarGridSpec(
            num_scalar_prefetch=0,
            grid=grid,
            in_specs=[
                # x tile: depends on (batch tile i, K tile k)
                pl.BlockSpec((tm, tk), lambda j, i, k: (i, k)),
                # weight tile (K, N): depends on (k, j) -> reused across batch
                pl.BlockSpec((tk, tn), lambda j, i, k: (k, j)),
                # bias tile: indexed by the N tile only
                pl.BlockSpec((1, tn), lambda j, i, k: (0, j)),
            ],
            out_specs=pl.BlockSpec((tm, tn), lambda j, i, k: (i, j)),
            scratch_shapes=[pltpu.VMEM((tm, tn), jnp.float32)],
        ),
        compiler_params=pltpu.CompilerParams(
            # j (classes) and i (batch) are independent; k is the reduction.
            dimension_semantics=("parallel", "parallel", "arbitrary"),
            vmem_limit_bytes=_vmem_limit_bytes(),
        ),
        cost_estimate=cost,
    )(xp, wt, bp)

    return out[:M, :N].reshape(*lead_shape, N)


if __name__ == "__main__":
    # Small shapes consistent with the module: numFeatureDim=32, numClass=16, batch=8.
    batch, num_feature_dim, num_class = 8, 32, 16

    key = jax.random.PRNGKey(0)
    kx, kw = jax.random.split(key)

    # Deterministic parameter init mirroring the PyTorch __init__:
    #   weight ~ Normal(mean=0, std=0.1), bias = 0
    weight = 0.1 * jax.random.normal(
        kw, (num_class, num_feature_dim), dtype=jnp.float32)
    bias = jnp.zeros((num_class,), dtype=jnp.float32)

    x = jax.random.normal(kx, (batch, num_feature_dim), dtype=jnp.float32)

    # One-time param prep (analogous to module construction), then forward.
    params = prepare_classifier_params(weight, bias, use_bf16=True)
    out = classifier_forward(x, params)
    out = jax.block_until_ready(out)

    # Correctness check against plain-JAX f32 reference of x @ W.T + b
    # (bf16 weight + bf16-cast x with f32 accumulation -> loose-ish tolerance).
    ref = x @ weight.T + bias
    assert out.shape == (batch, num_class)
    assert jnp.allclose(out, ref, atol=2e-2, rtol=2e-2), "mismatch vs reference"

    print("KERNEL_OK")
</pallas_src>

<mosaic_0001>
module attributes {stable_mosaic.version = 11 : i64} {
  func.func @_linear_kernel(%arg0: i32, %arg1: i32, %arg2: i32, %arg3: memref<8x128xf32, #tpu.memory_space<vmem>>, %arg4: memref<128x128xbf16, #tpu.memory_space<vmem>>, %arg5: memref<1x128xf32, #tpu.memory_space<vmem>>, %arg6: memref<8x128xf32, #tpu.memory_space<vmem>>, %arg7: memref<8x128xf32, #tpu.memory_space<vmem>>) attributes {dimension_semantics = [#tpu.dimension_semantics<parallel>, #tpu.dimension_semantics<parallel>, #tpu.dimension_semantics<arbitrary>], iteration_bounds = array<i64: 1, 1, 1>, scalar_prefetch = 0 : i64, scratch_operands = 1 : i64, tpu.core_type = #tpu.core_type<tc>, window_params = [{transform_indices = @transform_0, window_bounds = array<i64: 8, 128>}, {transform_indices = @transform_1, window_bounds = array<i64: 128, 128>}, {transform_indices = @transform_2, window_bounds = array<i64: 1, 128>}, {transform_indices = @transform_3, window_bounds = array<i64: 8, 128>}]} {
    %c0_i32 = arith.constant 0 : i32
    %0 = arith.cmpi eq, %arg2, %c0_i32 : i32
    %1 = arith.extui %0 : i1 to i32
    %c0_i32_0 = arith.constant 0 : i32
    %2 = arith.cmpi ne, %1, %c0_i32_0 : i32
    scf.if %2 {
      %cst_10 = arith.constant 0.000000e+00 : f32
      %13 = vector.broadcast %cst_10 : f32 to vector<8x128xf32>
      %c0_11 = arith.constant 0 : index
      %c0_12 = arith.constant 0 : index
      %14 = vector.load %arg7[%c0_11, %c0_12] : memref<8x128xf32, #tpu.memory_space<vmem>>, vector<8x128xf32>
      tpu.vector_store %arg7[%c0_11, %c0_12], %13 {strides = array<i32>} : memref<8x128xf32, #tpu.memory_space<vmem>>, vector<8x128xf32>,
    } else {
    }
    %c0 = arith.constant 0 : index
    %c0_1 = arith.constant 0 : index
    %3 = vector.load %arg7[%c0, %c0_1] : memref<8x128xf32, #tpu.memory_space<vmem>>, vector<8x128xf32>
    %c0_2 = arith.constant 0 : index
    %c0_3 = arith.constant 0 : index
    %4 = vector.load %arg3[%c0_2, %c0_3] : memref<8x128xf32, #tpu.memory_space<vmem>>, vector<8x128xf32>
    %5 = arith.truncf %4 : vector<8x128xf32> to vector<8x128xbf16>
    %c0_4 = arith.constant 0 : index
    %c0_5 = arith.constant 0 : index
    %6 = vector.load %arg4[%c0_4, %c0_5] : memref<128x128xbf16, #tpu.memory_space<vmem>>, vector<128x128xbf16>
    %cst = arith.constant dense<0.000000e+00> : vector<8x128xf32>
    %7 = tpu.matmul %5, %6, %cst {dimension_numbers = #tpu.dot_dimension_numbers<[1], [0], [0], [1], [0, 0, 1, 1], [], []>} : vector<8x128xbf16>, vector<128x128xbf16>, vector<8x128xf32> -> vector<8x128xf32>
    %8 = arith.addf %3, %7 : vector<8x128xf32>
    %c0_6 = arith.constant 0 : index
    %c0_7 = arith.constant 0 : index
    %9 = vector.load %arg7[%c0_6, %c0_7] : memref<8x128xf32, #tpu.memory_space<vmem>>, vector<8x128xf32>
    tpu.vector_store %arg7[%c0_6, %c0_7], %8 {strides = array<i32>} : memref<8x128xf32, #tpu.memory_space<vmem>>, vector<8x128xf32>,
    %c0_i32_8 = arith.constant 0 : i32
    %10 = arith.cmpi eq, %arg2, %c0_i32_8 : i32
    %11 = arith.extui %10 : i1 to i32
    %c0_i32_9 = arith.constant 0 : i32
    %12 = arith.cmpi ne, %11, %c0_i32_9 : i32
    scf.if %12 {
      %c0_10 = arith.constant 0 : index
      %c0_11 = arith.constant 0 : index
      %13 = vector.load %arg7[%c0_10, %c0_11] : memref<8x128xf32, #tpu.memory_space<vmem>>, vector<8x128xf32>
      %c0_12 = arith.constant 0 : index
      %c0_13 = arith.constant 0 : index
      %14 = vector.load %arg5[%c0_12, %c0_13] : memref<1x128xf32, #tpu.memory_space<vmem>>, vector<1x128xf32>
      %15 = vector.broadcast %14 : vector<1x128xf32> to vector<8x128xf32>
      %16 = arith.addf %13, %15 : vector<8x128xf32>
      %c0_14 = arith.constant 0 : index
      %c0_15 = arith.constant 0 : index
      %17 = vector.load %arg6[%c0_14, %c0_15] : memref<8x128xf32, #tpu.memory_space<vmem>>, vector<8x128xf32>
      tpu.vector_store %arg6[%c0_14, %c0_15], %16 {strides = array<i32>} : memref<8x128xf32, #tpu.memory_space<vmem>>, vector<8x128xf32>,
    } else {
    }
    return
  }
  func.func @transform_0(%arg0: i32, %arg1: i32, %arg2: i32) -> (i32, i32) {
    %c0_i32 = arith.constant 0 : i32
    return %arg1, %arg2 : i32, i32
  }
  func.func @transform_1(%arg0: i32, %arg1: i32, %arg2: i32) -> (i32, i32) {
    %c0_i32 = arith.constant 0 : i32
    return %arg2, %arg0 : i32, i32
  }
  func.func @transform_2(%arg0: i32, %arg1: i32, %arg2: i32) -> (i32, i32) {
    %c0_i32 = arith.constant 0 : i32
    %c0_i32_0 = arith.constant 0 : i32
    return %c0_i32, %arg0 : i32, i32
  }
  func.func @transform_3(%arg0: i32, %arg1: i32, %arg2: i32) -> (i32, i32) {
    %c0_i32 = arith.constant 0 : i32
    return %arg1, %arg0 : i32, i32
  }
}

</mosaic_0001>

<bundles_post_ra>
// kernel: tpu_custom_call.1
= control target key start
LH: loop header
LB: loop body
LE: loop exit
PB: predicated region body
PF: predicated region fallthrough
CT: control target
= control target key end

     0   :  { %8 = vsyncpa [#allocation4], 0  ;;  %s321_s0 = inlined_call_operand.hbm [shape: f32[8,128], index: 0, kind: input, shape index: {}]   ;;  %s322_s1 = inlined_call_operand.hbm [shape: bf16[128,128], index: 1, kind: input, shape index: {}]   ;;  %s323_s2 = inlined_call_operand.vmem [shape: f32[1,128], index: 2, kind: input, shape index: {}]   ;;  %s324_s3 = inlined_call_operand.hbm [shape: f32[8,128], index: 3, kind: output, shape index: {}]  }
   0x1   :  { %9 = vsyncpa [#allocation7], 0 }
   0x2   :  { %10 = vsyncpa [#allocation5], 0  ;;  %s16_s14 = sshll.u32 %s321_s0, 4  ;;  %s284_s15 = smov [#allocation3]   ;;  %s17_s14 = int_to_ptr.hbm [resolvable:$true] %s16_s14 }
   0x3   :  { %s18_s16 = sshll.u32 %s284_s15, 4  ;;  %s26_s19 = sshll.u32 %s322_s1, 4  ;;  %s19_s16 = int_to_ptr.vmem [resolvable:$true] %s18_s16  ;;  %s27_s19 = int_to_ptr.hbm [resolvable:$true] %s26_s19 }
   0x4   :  { %21 = dma.hbm_to_vmem [thread:$0]  %s17_s14, 128, %s19_s16, [#allocation4]  }
   0x5   :  { %s285_s20 = smov [#allocation6]   ;;  %s286_s22 = smov 64  }
   0x6   :  { %s28_s21 = sshll.u32 %s285_s20, 4  ;;  %s287_s23 = smov 4   ;;  %s29_s21 = int_to_ptr.vmem [resolvable:$true] %s28_s21 }
   0x7   :  { %34 = dma.hbm_to_vmem [thread:$0]  %s27_s19, 1024, %s29_s21, [#allocation7], %s286_s22, %s286_s22, %s287_s23  }
   0x8   :  { %278 = dma.done.wait [#allocation4], 128  }
   0x9   :  { %279 = vsyncadd [#allocation4], 4294967168 }
   0xa   :  { %280 = dma.done.wait [#allocation7], 1024  }
   0xb   :  { %281 = vsyncadd [#allocation7], 4294966272  ;;  %v199_v0 = vld [vmem:[#allocation6 + $0x38] sm:$0xff]  ;;  %v198_v1 = vld [vmem:[#allocation6 + $0x30] sm:$0xff]  ;;  %s288_s24 = smov [#allocation8]   ;;  %s149_s28 = sshll.u32 %s324_s3, 4  ;;  %s150_s28 = int_to_ptr.hbm [resolvable:$true] %s149_s28 }
   0xc   :  { %117 = vmatpush.bf16.msra.mxu0 %v199_v0  ;;  %v197_v2 = vld [vmem:[#allocation6 + $0x28] sm:$0xff]  ;;  %v196_v3 = vld [vmem:[#allocation6 + $0x20] sm:$0xff]  ;;  %v195_v4 = vld [vmem:[#allocation6 + $0x18] sm:$0xff]  ;;  %s147_s25 = sshll.u32 %s288_s24, 4  ;;  %s148_s25 = int_to_ptr.vmem [resolvable:$true] %s147_s25 }
   0xd   :  { %v194_v5 = vld [vmem:[#allocation6 + $0x10] sm:$0xff]  ;;  %v193_v6 = vld [vmem:[#allocation6 + $0x8] sm:$0xff]  ;;  %v192_v7 = vld [vmem:[#allocation6] sm:$0xff] }
   0xe   :  { %v51_v8 = vld [vmem:[#allocation3] sm:$0xff] }
   0xf   :  { %v52_v9 = vpack.c.bf16 %v51_v8, %v51_v8  ;;  %v205_v10 = vld [vmem:[%s323_s2] ss:$0 sm:$0xff] }
  0x10   :  { %118 = vmatpush.bf16.msra.mxu0 %v198_v1 }
  0x14   :  { %119 = vmatpush.bf16.msra.mxu0 %v197_v2 }
  0x18   :  { %120 = vmatpush.bf16.msra.mxu0 %v196_v3 }
  0x1c   :  { %121 = vmatpush.bf16.msra.mxu0 %v195_v4 }
  0x20   :  { %122 = vmatpush.bf16.msra.mxu0 %v194_v5 }
  0x24   :  { %123 = vmatpush.bf16.msra.mxu0 %v193_v6 }
  0x28   :  { %124 = vmatpush.bf16.msra.mxu0 %v192_v7 }
  0x2b   :  { %125 = vmatmul.bf16.vlgmr.msra.gmra.mxu0 %v52_v9 }
  0xa8   :  { %v126_v11 = vpop.f32.mrf.mxu0 }
  0xa9   :  { %v140_v12 = vadd.f32 %v205_v10, %v126_v11 }
  0xab   :  { %141 = vst [vmem:[#allocation8] sm:$0xff] %v140_v12 }
  0xac   :  { %152 = dma.vmem_to_hbm [thread:$0]  %s148_s25, 128, %s150_s28, [#allocation5]  }
  0xb0   :  { %v128_v13 = vpop.f32.mrf.mxu0 }
  0xb1   :  { %282 = dma.done.wait [#allocation5], 128  }
  0xb2   :  { %283 = vsyncadd [#allocation5], 4294967168 }
  0xb3   :  { %157 = vsyncpa [#allocation4], 1 }
  0xb4   :  { %158 = vsyncpa [#allocation7], 1 }
  0xb5   :  { %159 = vsyncpa [#allocation5], 1 }

</bundles_post_ra>
